<compile_context>
chip_gen: v7x
topology: tpu7x:2x2x1
jax: 0.10.0
libtpu: 0.0.40
codegen_flags: <defaults>
</compile_context>

<pallas_src>
import jax
import jax.numpy as jnp
from jax.experimental import pallas as pl
from jax.experimental.pallas import tpu as pltpu


def relu6(x):
    return jnp.clip(x, 0.0, 6.0)


def _round_up(n, m):
    return ((n + m - 1) // m) * m


def mlp_kernel(x_ref, y_ref,
               w1x_ref, w1y_ref, b1_ref,
               w2_ref, b2_ref,
               w3_ref, b3_ref,
               w4t_ref, b4_ref,
               o_ref):
    cdt = w1x_ref.dtype  # compute (matmul-input) dtype, e.g. bf16

    x = x_ref[...].astype(cdt)
    y = y_ref[...].astype(cdt)

    # Layer 1: split matmul replaces cat(X, Y) @ W1 (no cross-lane concat).
    h = (jnp.dot(x, w1x_ref[...], preferred_element_type=jnp.float32)
         + jnp.dot(y, w1y_ref[...], preferred_element_type=jnp.float32)
         + b1_ref[...])
    h = relu6(h).astype(cdt)

    # Layer 2
    h = jnp.dot(h, w2_ref[...], preferred_element_type=jnp.float32) + b2_ref[...]
    h = relu6(h).astype(cdt)

    # Layer 3
    h = jnp.dot(h, w3_ref[...], preferred_element_type=jnp.float32) + b3_ref[...]
    h = relu6(h).astype(cdt)

    # Layer 4, produced directly as a lane-dense (1, bm) row:
    #   out_row = W4^T (1,H) contracted with h (bm,H) over the hidden axis.
    out_row = jax.lax.dot_general(
        w4t_ref[...], h,
        dimension_numbers=(((1,), (1,)), ((), ())),
        preferred_element_type=jnp.float32)
    out_row = out_row + b4_ref[...]          # (1,1) broadcasts over lanes

    o_ref[...] = out_row.astype(o_ref.dtype)


def mlp_forward(x, y, params, *, bm=None, compute_dtype=jnp.bfloat16):
    """x: (B, Dx), y: (B, Dy) — f32 or bf16 accepted as-is (bf16 halves input DMA).
    params: weights stored (in, out), biases (1, out).
    compute_dtype=jnp.float32 gives an exact-parity fallback (no bf16 rounding)."""
    B, dx = x.shape
    _, dy = y.shape
    hidden = params["w1"].shape[1]

    if B == 0:
        return jnp.zeros((0, 1), jnp.float32)

    # --- batch tiling heuristic ---------------------------------------------
    if bm is None:
        if B <= 256:
            # Single grid step; multiple of 16 so bf16 vregs are fully packed.
            bm = _round_up(B, 16)
        else:
            # Larger tiles when hidden is small (per-step overhead dominates),
            # MXU-sized tiles otherwise; always >= 2 tiles so v7x's second
            # TensorCore gets work, and a multiple of 128 for the lane-dense
            # output block / MXU M dimension.
            target = 512 if hidden <= 256 else 256
            half = -(-B // 2)
            bm = max(128, min(target, _round_up(half, 128)))
    else:
        bm = max(16, _round_up(bm, 16))
    num_tiles = pl.cdiv(B, bm)
    b_pad = num_tiles * bm
    if b_pad != B:
        pad = b_pad - B
        x = jnp.pad(x, ((0, pad), (0, 0)))
        y = jnp.pad(y, ((0, pad), (0, 0)))

    # --- weight prep: compute-dtype matmul inputs, f32 biases, split W1, W4^T ---
    cdt = compute_dtype
    w1 = params["w1"].astype(cdt)
    w1x, w1y = w1[:dx], w1[dx:]                         # (dx, H), (dy, H)
    w2 = params["w2"].astype(cdt)                       # (H, H)
    w3 = params["w3"].astype(cdt)                       # (H, H)
    w4t = params["w4"].T.astype(cdt)                    # (1, H)
    b1 = params["b1"].astype(jnp.float32)               # (1, H)
    b2 = params["b2"].astype(jnp.float32)
    b3 = params["b3"].astype(jnp.float32)
    b4 = params["b4"].reshape(1, 1).astype(jnp.float32)  # (1, 1)

    # Constant (grid-invariant) blocks: single-buffered so they are resident
    # exactly once instead of twice.
    const = lambda shape: pl.BlockSpec(
        shape, lambda i: (0, 0), pipeline_mode=pl.Buffered(1))

    # --- VMEM budget: single-buffered weights + 2x I/O tiles + activations ---
    wbytes = jnp.dtype(cdt).itemsize
    weight_bytes = wbytes * ((dx + dy) * hidden + 2 * hidden * hidden + hidden)
    bias_bytes = 4 * (3 * hidden + 1)
    in_row_bytes = x.dtype.itemsize * dx + y.dtype.itemsize * dy
    io_bytes = 2 * bm * (in_row_bytes + 4)               # double-buffered X/Y + out row
    act_bytes = 2 * bm * hidden * (4 + wbytes)           # f32 + cdt intermediates
    vmem_budget = int(1.25 * (weight_bytes + bias_bytes + io_bytes + act_bytes))
    vmem_budget = min(max(vmem_budget + (1 << 20), 4 << 20), 64 << 20)
    # TODO(synk): at very large hidden (H >~ 3200 in bf16) W2/W3 no longer fit
    # v7x's 64 MiB VMEM resident; stream hidden-column tiles via a grid axis.

    flops = 2 * b_pad * hidden * (dx + dy + 2 * hidden + 1)
    bytes_accessed = (b_pad * in_row_bytes                                  # X, Y
                      + weight_bytes + bias_bytes                           # params
                      + 4 * b_pad)                                          # output

    out_row = pl.pallas_call(
        mlp_kernel,
        out_shape=jax.ShapeDtypeStruct((1, b_pad), jnp.float32),
        grid=(num_tiles,),
        in_specs=[
            pl.BlockSpec((bm, dx), lambda i: (i, 0)),     # X tile
            pl.BlockSpec((bm, dy), lambda i: (i, 0)),     # Y tile
            const((dx, hidden)),                          # W1[:dx]
            const((dy, hidden)),                          # W1[dx:]
            const((1, hidden)),                           # b1
            const((hidden, hidden)), const((1, hidden)),  # W2, b2
            const((hidden, hidden)), const((1, hidden)),  # W3, b3
            const((1, hidden)),      const((1, 1)),       # W4^T, b4
        ],
        # Lane-dense output slab: (1, b_pad), each grid step writes a (1, bm) row.
        out_specs=pl.BlockSpec((1, bm), lambda i: (0, i)),
        compiler_params=pltpu.CompilerParams(
            dimension_semantics=("parallel",),
            vmem_limit_bytes=vmem_budget),
        cost_estimate=pl.CostEstimate(
            flops=flops, transcendentals=0, bytes_accessed=bytes_accessed),
    )(x, y, w1x, w1y, b1, w2, b2, w3, b3, w4t, b4)

    # Layout plumbing back to the module's (B, 1) output (free in the wrapper).
    return out_row.reshape(b_pad, 1)[:B]


def init_params(key, input_size, hidden_size):
    """Deterministic init matching torch.nn.Linear shapes (weights stored (in, out))."""
    sizes = [(input_size, hidden_size),
             (hidden_size, hidden_size),
             (hidden_size, hidden_size),
             (hidden_size, 1)]
    params = {}
    for idx, (fan_in, fan_out) in enumerate(sizes, start=1):
        key, kw, kb = jax.random.split(key, 3)
        bound = 1.0 / jnp.sqrt(fan_in)
        params[f"w{idx}"] = jax.random.uniform(
            kw, (fan_in, fan_out), jnp.float32, -bound, bound)
        params[f"b{idx}"] = jax.random.uniform(
            kb, (1, fan_out), jnp.float32, -bound, bound)
    return params


def mlp_reference(x, y, params):
    z = jnp.concatenate([x, y], axis=1)
    h = relu6(z @ params["w1"] + params["b1"])
    h = relu6(h @ params["w2"] + params["b2"])
    h = relu6(h @ params["w3"] + params["b3"])
    return h @ params["w4"] + params["b4"]


if __name__ == "__main__":
    B, DX, DY, HIDDEN = 16, 16, 16, 32   # input_size = DX + DY = 32
    key = jax.random.PRNGKey(0)
    kx, ky, kp = jax.random.split(key, 3)
    x = jax.random.normal(kx, (B, DX), jnp.float32)
    y = jax.random.normal(ky, (B, DY), jnp.float32)
    params = init_params(kp, DX + DY, HIDDEN)

    out = mlp_forward(x, y, params)          # bf16 matmul inputs, f32 accumulation
    out = jax.block_until_ready(out)

    ref = mlp_reference(x, y, params)        # pure-f32 reference
    assert out.shape == (B, 1)
    # bf16 matmul inputs -> relaxed tolerance vs. the f32 reference.
    assert jnp.allclose(out, ref, atol=5e-2, rtol=5e-2), "mismatch vs reference"
    print("KERNEL_OK")
</pallas_src>

<mosaic_0001>
module attributes {stable_mosaic.version = 11 : i64} {
  func.func @mlp_kernel(%arg0: i32, %arg1: memref<16x16xf32, #tpu.memory_space<vmem>>, %arg2: memref<16x16xf32, #tpu.memory_space<vmem>>, %arg3: memref<16x32xbf16, #tpu.memory_space<vmem>>, %arg4: memref<16x32xbf16, #tpu.memory_space<vmem>>, %arg5: memref<1x32xf32, #tpu.memory_space<vmem>>, %arg6: memref<32x32xbf16, #tpu.memory_space<vmem>>, %arg7: memref<1x32xf32, #tpu.memory_space<vmem>>, %arg8: memref<32x32xbf16, #tpu.memory_space<vmem>>, %arg9: memref<1x32xf32, #tpu.memory_space<vmem>>, %arg10: memref<1x32xbf16, #tpu.memory_space<vmem>>, %arg11: memref<1x1xf32, #tpu.memory_space<vmem>>, %arg12: memref<1x16xf32, #tpu.memory_space<vmem>>) attributes {dimension_semantics = [#tpu.dimension_semantics<parallel>], iteration_bounds = array<i64: 1>, scalar_prefetch = 0 : i64, scratch_operands = 0 : i64, tpu.core_type = #tpu.core_type<tc>, window_params = [{transform_indices = @transform_0, window_bounds = array<i64: 16, 16>}, {transform_indices = @transform_1, window_bounds = array<i64: 16, 16>}, {pipeline_mode = #tpu.pipeline_mode<synchronous>, transform_indices = @transform_2, window_bounds = array<i64: 16, 32>}, {pipeline_mode = #tpu.pipeline_mode<synchronous>, transform_indices = @transform_3, window_bounds = array<i64: 16, 32>}, {pipeline_mode = #tpu.pipeline_mode<synchronous>, transform_indices = @transform_4, window_bounds = array<i64: 1, 32>}, {pipeline_mode = #tpu.pipeline_mode<synchronous>, transform_indices = @transform_5, window_bounds = array<i64: 32, 32>}, {pipeline_mode = #tpu.pipeline_mode<synchronous>, transform_indices = @transform_6, window_bounds = array<i64: 1, 32>}, {pipeline_mode = #tpu.pipeline_mode<synchronous>, transform_indices = @transform_7, window_bounds = array<i64: 32, 32>}, {pipeline_mode = #tpu.pipeline_mode<synchronous>, transform_indices = @transform_8, window_bounds = array<i64: 1, 32>}, {pipeline_mode = #tpu.pipeline_mode<synchronous>, transform_indices = @transform_9, window_bounds = array<i64: 1, 32>}, {pipeline_mode = #tpu.pipeline_mode<synchronous>, transform_indices = @transform_10, window_bounds = array<i64: 1, 1>}, {transform_indices = @transform_11, window_bounds = array<i64: 1, 16>}]} {
    %c0 = arith.constant 0 : index
    %c0_0 = arith.constant 0 : index
    %0 = vector.load %arg1[%c0, %c0_0] : memref<16x16xf32, #tpu.memory_space<vmem>>, vector<16x16xf32>
    %1 = arith.truncf %0 : vector<16x16xf32> to vector<16x16xbf16>
    %c0_1 = arith.constant 0 : index
    %c0_2 = arith.constant 0 : index
    %2 = vector.load %arg2[%c0_1, %c0_2] : memref<16x16xf32, #tpu.memory_space<vmem>>, vector<16x16xf32>
    %3 = arith.truncf %2 : vector<16x16xf32> to vector<16x16xbf16>
    %c0_3 = arith.constant 0 : index
    %c0_4 = arith.constant 0 : index
    %4 = vector.load %arg3[%c0_3, %c0_4] : memref<16x32xbf16, #tpu.memory_space<vmem>>, vector<16x32xbf16>
    %cst = arith.constant dense<0.000000e+00> : vector<16x32xf32>
    %5 = tpu.matmul %1, %4, %cst {dimension_numbers = #tpu.dot_dimension_numbers<[1], [0], [0], [1], [0, 0, 1, 1], [], []>} : vector<16x16xbf16>, vector<16x32xbf16>, vector<16x32xf32> -> vector<16x32xf32>
    %c0_5 = arith.constant 0 : index
    %c0_6 = arith.constant 0 : index
    %6 = vector.load %arg4[%c0_5, %c0_6] : memref<16x32xbf16, #tpu.memory_space<vmem>>, vector<16x32xbf16>
    %cst_7 = arith.constant dense<0.000000e+00> : vector<16x32xf32>
    %7 = tpu.matmul %3, %6, %cst_7 {dimension_numbers = #tpu.dot_dimension_numbers<[1], [0], [0], [1], [0, 0, 1, 1], [], []>} : vector<16x16xbf16>, vector<16x32xbf16>, vector<16x32xf32> -> vector<16x32xf32>
    %8 = arith.addf %5, %7 : vector<16x32xf32>
    %c0_8 = arith.constant 0 : index
    %c0_9 = arith.constant 0 : index
    %9 = vector.load %arg5[%c0_8, %c0_9] : memref<1x32xf32, #tpu.memory_space<vmem>>, vector<1x32xf32>
    %10 = vector.broadcast %9 : vector<1x32xf32> to vector<16x32xf32>
    %11 = arith.addf %8, %10 : vector<16x32xf32>
    %cst_10 = arith.constant 0.000000e+00 : f32
    %cst_11 = arith.constant 6.000000e+00 : f32
    %12 = vector.broadcast %cst_10 : f32 to vector<16x32xf32>
    %13 = arith.maximumf %12, %11 : vector<16x32xf32>
    %14 = vector.broadcast %cst_11 : f32 to vector<16x32xf32>
    %15 = arith.minimumf %14, %13 : vector<16x32xf32>
    %16 = arith.truncf %15 : vector<16x32xf32> to vector<16x32xbf16>
    %c0_12 = arith.constant 0 : index
    %c0_13 = arith.constant 0 : index
    %17 = vector.load %arg6[%c0_12, %c0_13] : memref<32x32xbf16, #tpu.memory_space<vmem>>, vector<32x32xbf16>
    %cst_14 = arith.constant dense<0.000000e+00> : vector<16x32xf32>
    %18 = tpu.matmul %16, %17, %cst_14 {dimension_numbers = #tpu.dot_dimension_numbers<[1], [0], [0], [1], [0, 0, 1, 1], [], []>} : vector<16x32xbf16>, vector<32x32xbf16>, vector<16x32xf32> -> vector<16x32xf32>
    %c0_15 = arith.constant 0 : index
    %c0_16 = arith.constant 0 : index
    %19 = vector.load %arg7[%c0_15, %c0_16] : memref<1x32xf32, #tpu.memory_space<vmem>>, vector<1x32xf32>
    %20 = vector.broadcast %19 : vector<1x32xf32> to vector<16x32xf32>
    %21 = arith.addf %18, %20 : vector<16x32xf32>
    %cst_17 = arith.constant 0.000000e+00 : f32
    %cst_18 = arith.constant 6.000000e+00 : f32
    %22 = vector.broadcast %cst_17 : f32 to vector<16x32xf32>
    %23 = arith.maximumf %22, %21 : vector<16x32xf32>
    %24 = vector.broadcast %cst_18 : f32 to vector<16x32xf32>
    %25 = arith.minimumf %24, %23 : vector<16x32xf32>
    %26 = arith.truncf %25 : vector<16x32xf32> to vector<16x32xbf16>
    %c0_19 = arith.constant 0 : index
    %c0_20 = arith.constant 0 : index
    %27 = vector.load %arg8[%c0_19, %c0_20] : memref<32x32xbf16, #tpu.memory_space<vmem>>, vector<32x32xbf16>
    %cst_21 = arith.constant dense<0.000000e+00> : vector<16x32xf32>
    %28 = tpu.matmul %26, %27, %cst_21 {dimension_numbers = #tpu.dot_dimension_numbers<[1], [0], [0], [1], [0, 0, 1, 1], [], []>} : vector<16x32xbf16>, vector<32x32xbf16>, vector<16x32xf32> -> vector<16x32xf32>
    %c0_22 = arith.constant 0 : index
    %c0_23 = arith.constant 0 : index
    %29 = vector.load %arg9[%c0_22, %c0_23] : memref<1x32xf32, #tpu.memory_space<vmem>>, vector<1x32xf32>
    %30 = vector.broadcast %29 : vector<1x32xf32> to vector<16x32xf32>
    %31 = arith.addf %28, %30 : vector<16x32xf32>
    %cst_24 = arith.constant 0.000000e+00 : f32
    %cst_25 = arith.constant 6.000000e+00 : f32
    %32 = vector.broadcast %cst_24 : f32 to vector<16x32xf32>
    %33 = arith.maximumf %32, %31 : vector<16x32xf32>
    %34 = vector.broadcast %cst_25 : f32 to vector<16x32xf32>
    %35 = arith.minimumf %34, %33 : vector<16x32xf32>
    %36 = arith.truncf %35 : vector<16x32xf32> to vector<16x32xbf16>
    %c0_26 = arith.constant 0 : index
    %c0_27 = arith.constant 0 : index
    %37 = vector.load %arg10[%c0_26, %c0_27] : memref<1x32xbf16, #tpu.memory_space<vmem>>, vector<1x32xbf16>
    %cst_28 = arith.constant dense<0.000000e+00> : vector<1x16xf32>
    %38 = tpu.matmul %37, %36, %cst_28 {dimension_numbers = #tpu.dot_dimension_numbers<[1], [1], [0], [0], [0, 0, 1, 0], [], []>} : vector<1x32xbf16>, vector<16x32xbf16>, vector<1x16xf32> -> vector<1x16xf32>
    %c0_29 = arith.constant 0 : index
    %c0_30 = arith.constant 0 : index
    %39 = vector.load %arg11[%c0_29, %c0_30] : memref<1x1xf32, #tpu.memory_space<vmem>>, vector<1x1xf32>
    %40 = vector.broadcast %39 : vector<1x1xf32> to vector<1x16xf32>
    %41 = arith.addf %38, %40 : vector<1x16xf32>
    %c0_31 = arith.constant 0 : index
    %c0_32 = arith.constant 0 : index
    %42 = vector.load %arg12[%c0_31, %c0_32] : memref<1x16xf32, #tpu.memory_space<vmem>>, vector<1x16xf32>
    tpu.vector_store %arg12[%c0_31, %c0_32], %41 {strides = array<i32>} : memref<1x16xf32, #tpu.memory_space<vmem>>, vector<1x16xf32>,
    return
  }
  func.func @transform_0(%arg0: i32) -> (i32, i32) {
    %c0_i32 = arith.constant 0 : i32
    %c0_i32_0 = arith.constant 0 : i32
    return %arg0, %c0_i32 : i32, i32
  }
  func.func @transform_1(%arg0: i32) -> (i32, i32) {
    %c0_i32 = arith.constant 0 : i32
    %c0_i32_0 = arith.constant 0 : i32
    return %arg0, %c0_i32 : i32, i32
  }
  func.func @transform_2(%arg0: i32) -> (i32, i32) {
    %c0_i32 = arith.constant 0 : i32
    %c0_i32_0 = arith.constant 0 : i32
    %c0_i32_1 = arith.constant 0 : i32
    return %c0_i32, %c0_i32_0 : i32, i32
  }
  func.func @transform_3(%arg0: i32) -> (i32, i32) {
    %c0_i32 = arith.constant 0 : i32
    %c0_i32_0 = arith.constant 0 : i32
    %c0_i32_1 = arith.constant 0 : i32
    return %c0_i32, %c0_i32_0 : i32, i32
  }
  func.func @transform_4(%arg0: i32) -> (i32, i32) {
    %c0_i32 = arith.constant 0 : i32
    %c0_i32_0 = arith.constant 0 : i32
    %c0_i32_1 = arith.constant 0 : i32
    return %c0_i32, %c0_i32_0 : i32, i32
  }
  func.func @transform_5(%arg0: i32) -> (i32, i32) {
    %c0_i32 = arith.constant 0 : i32
    %c0_i32_0 = arith.constant 0 : i32
    %c0_i32_1 = arith.constant 0 : i32
    return %c0_i32, %c0_i32_0 : i32, i32
  }
  func.func @transform_6(%arg0: i32) -> (i32, i32) {
    %c0_i32 = arith.constant 0 : i32
    %c0_i32_0 = arith.constant 0 : i32
    %c0_i32_1 = arith.constant 0 : i32
    return %c0_i32, %c0_i32_0 : i32, i32
  }
  func.func @transform_7(%arg0: i32) -> (i32, i32) {
    %c0_i32 = arith.constant 0 : i32
    %c0_i32_0 = arith.constant 0 : i32
    %c0_i32_1 = arith.constant 0 : i32
    return %c0_i32, %c0_i32_0 : i32, i32
  }
  func.func @transform_8(%arg0: i32) -> (i32, i32) {
    %c0_i32 = arith.constant 0 : i32
    %c0_i32_0 = arith.constant 0 : i32
    %c0_i32_1 = arith.constant 0 : i32
    return %c0_i32, %c0_i32_0 : i32, i32
  }
  func.func @transform_9(%arg0: i32) -> (i32, i32) {
    %c0_i32 = arith.constant 0 : i32
    %c0_i32_0 = arith.constant 0 : i32
    %c0_i32_1 = arith.constant 0 : i32
    return %c0_i32, %c0_i32_0 : i32, i32
  }
  func.func @transform_10(%arg0: i32) -> (i32, i32) {
    %c0_i32 = arith.constant 0 : i32
    %c0_i32_0 = arith.constant 0 : i32
    %c0_i32_1 = arith.constant 0 : i32
    return %c0_i32, %c0_i32_0 : i32, i32
  }
  func.func @transform_11(%arg0: i32) -> (i32, i32) {
    %c0_i32 = arith.constant 0 : i32
    %c0_i32_0 = arith.constant 0 : i32
    return %c0_i32, %arg0 : i32, i32
  }
}

</mosaic_0001>

<bundles_post_ra>
// kernel: tpu_custom_call.1
= control target key start
LH: loop header
LB: loop body
LE: loop exit
PB: predicated region body
PF: predicated region fallthrough
CT: control target
= control target key end

     0   :  { %s866_s0 = inlined_call_operand.hbm [shape: f32[16,16], index: 0, kind: input, shape index: {}]   ;;  %s867_s1 = inlined_call_operand.hbm [shape: f32[16,16], index: 1, kind: input, shape index: {}]   ;;  %s868_s2 = inlined_call_operand.hbm [shape: bf16[16,32], index: 2, kind: input, shape index: {}]   ;;  %s869_s3 = inlined_call_operand.hbm [shape: bf16[16,32], index: 3, kind: input, shape index: {}]   ;;  %s870_s4 = inlined_call_operand.vmem [shape: f32[1,32], index: 4, kind: input, shape index: {}]   ;;  %s871_s5 = inlined_call_operand.vmem [shape: bf16[32,32], index: 5, kind: input, shape index: {}]   ;;  %s872_s6 = inlined_call_operand.vmem [shape: f32[1,32], index: 6, kind: input, shape index: {}]   ;;  %s873_s7 = inlined_call_operand.hbm [shape: bf16[32,32], index: 7, kind: input, shape index: {}]   ;;  %s874_s8 = inlined_call_operand.vmem [shape: f32[1,32], index: 8, kind: input, shape index: {}]   ;;  %s875_s9 = inlined_call_operand.vmem [shape: bf16[1,32], index: 9, kind: input, shape index: {}]   ;;  %s876_s10 = inlined_call_operand.<no memory space> [shape: f32[1,1], index: 10, kind: input, shape index: {}]   ;;  %s877_s11 = inlined_call_operand.hbm [shape: f32[1,16], index: 11, kind: output, shape index: {}]  }
   0x1   :  { %v16_v0 = vstv %s876_s10 }
   0x2   :  { %17 = vst [vmem:[#allocation2] sm:$0x1] %v16_v0 }
   0x3   :  { %18 = vsyncpa [#allocation4], 0 }
   0x4   :  { %19 = vsyncpa [#allocation7], 0 }
   0x5   :  { %20 = vsyncpa [#allocation10], 0 }
   0x6   :  { %21 = vsyncpa [#allocation5], 0  ;;  %s676_s19 = smov [#allocation6]   ;;  %s536_s23 = scalar_lea.hbm %s867_s1, 256 }
   0x7   :  { %s39_s20 = sshll.u32 %s676_s19, 4  ;;  %p537_p0 = scmp.ne.s32.totalorder %s867_s1, %s536_s23  ;;  %s40_s20 = int_to_ptr.vmem [resolvable:$true] %s39_s20 }
   0x8   :  { %p540_p1 = scmp.lt.u32.totalorder %s536_s23, %s867_s1 }
   0xa   :  { %p542_p2 = pnand %p540_p1, %p537_p0 }
   0xc   :  { %545 = shalt.err (!%p542_p2)
}
   0xd   :  { %s546_s10 = scalar_lea.vmem %s40_s20, 256  ;;  %p551_p4 = scmp.lt.s32.totalorder %s40_s20, %s40_s20 }
   0xe   :  { %p547_p3 = scmp.ne.s32.totalorder %s40_s20, %s546_s10  ;;  %p552_p5 = scmp.lt.s32.totalorder %s546_s10, %s546_s10 }
  0x10   :  { %p553_p6 = por %p552_p5, %p551_p4 }
  0x12   :  { %p554_p7 = pnand %p553_p6, %p547_p3 }
  0x14   :  { %557 = shalt.err (!%p554_p7)
}
  0x15   :  { %s677_s28 = smov 128   ;;  %s678_s29 = smov 8  }
  0x16   :  { %45 = dma.hbm_to_vmem [thread:$0]  %s867_s1, 256, %s40_s20, [#allocation7], %s677_s28, %s677_s28, %s678_s29  }
  0x17   :  { %s679_s13 = smov [#allocation9]   ;;  %s680_s15 = smov [#allocation3]  }
  0x18   :  { %s63_s14 = sshll.u32 %s679_s13, 4  ;;  %s27_s16 = sshll.u32 %s680_s15, 4  ;;  %s64_s14 = int_to_ptr.vmem [resolvable:$true] %s63_s14  ;;  %s28_s16 = int_to_ptr.vmem [resolvable:$true] %s27_s16 }
  0x19   :  { %s558_s19 = scalar_lea.hbm %s869_s3, 128 }
  0x1a   :  { %p559_p8 = scmp.ne.s32.totalorder %s869_s3, %s558_s19  ;;  %p562_p9 = scmp.lt.u32.totalorder %s558_s19, %s869_s3 }
  0x1c   :  { %p564_p10 = pnand %p562_p9, %p559_p8 }
  0x1e   :  { %567 = shalt.err (!%p564_p10)
}
  0x1f   :  { %s568_s1 = scalar_lea.vmem %s64_s14, 128  ;;  %p573_p12 = scmp.lt.s32.totalorder %s64_s14, %s64_s14 }
  0x20   :  { %p569_p11 = scmp.ne.s32.totalorder %s64_s14, %s568_s1  ;;  %p574_p13 = scmp.lt.s32.totalorder %s568_s1, %s568_s1 }
  0x22   :  { %p575_p0 = por %p574_p13, %p573_p12 }
  0x24   :  { %p576_p1 = pnand %p575_p0, %p569_p11 }
  0x26   :  { %579 = shalt.err (!%p576_p1)
}
  0x27   :  { %s681_s20 = smov 64   ;;  %s682_s25 = smov 4  }
  0x28   :  { %69 = dma.hbm_to_vmem [thread:$0]  %s869_s3, 128, %s64_s14, [#allocation10], %s681_s20, %s681_s20, %s682_s25  }
  0x29   :  { %s580_s12 = scalar_lea.hbm %s866_s0, 256 }
  0x2a   :  { %p581_p2 = scmp.ne.s32.totalorder %s866_s0, %s580_s12  ;;  %p584_p3 = scmp.lt.u32.totalorder %s580_s12, %s866_s0 }
  0x2c   :  { %p586_p4 = pnand %p584_p3, %p581_p2 }
  0x2e   :  { %589 = shalt.err (!%p586_p4)
}
  0x2f   :  { %s590_s19 = scalar_lea.vmem %s28_s16, 256  ;;  %p595_p6 = scmp.lt.s32.totalorder %s28_s16, %s28_s16 }
  0x30   :  { %p591_p5 = scmp.ne.s32.totalorder %s28_s16, %s590_s19  ;;  %p596_p7 = scmp.lt.s32.totalorder %s590_s19, %s590_s19 }
  0x32   :  { %p597_p8 = por %p596_p7, %p595_p6 }
  0x34   :  { %p598_p9 = pnand %p597_p8, %p591_p5 }
  0x36   :  { %601 = shalt.err (!%p598_p9)
}
  0x37   :  { %33 = dma.hbm_to_vmem [thread:$0]  %s866_s0, 256, %s28_s16, [#allocation4], %s677_s28, %s677_s28, %s678_s29  }
  0x38   :  { %s683_s21 = smov [#allocation8]   ;;  %s684_s23 = smov [#allocation11]  }
  0x39   :  { %s51_s22 = sshll.u32 %s683_s21, 4  ;;  %s81_s24 = sshll.u32 %s684_s23, 4  ;;  %s52_s22 = int_to_ptr.vmem [resolvable:$true] %s51_s22  ;;  %s82_s24 = int_to_ptr.vmem [resolvable:$true] %s81_s24 }
  0x3a   :  { %s602_s27 = scalar_lea.hbm %s868_s2, 128 }
  0x3b   :  { %p603_p10 = scmp.ne.s32.totalorder %s868_s2, %s602_s27  ;;  %p606_p11 = scmp.lt.u32.totalorder %s602_s27, %s868_s2 }
  0x3d   :  { %p608_p12 = pnand %p606_p11, %p603_p10 }
  0x3f   :  { %611 = shalt.err (!%p608_p12)
}
  0x40   :  { %s612_s0 = scalar_lea.vmem %s52_s22, 128  ;;  %p617_p0 = scmp.lt.s32.totalorder %s52_s22, %s52_s22 }
  0x41   :  { %p613_p13 = scmp.ne.s32.totalorder %s52_s22, %s612_s0  ;;  %p618_p1 = scmp.lt.s32.totalorder %s612_s0, %s612_s0 }
  0x43   :  { %p619_p2 = por %p618_p1, %p617_p0 }
  0x45   :  { %p620_p3 = pnand %p619_p2, %p613_p13 }
  0x47   :  { %623 = shalt.err (!%p620_p3)
}
  0x48   :  { %57 = dma.hbm_to_vmem [thread:$0]  %s868_s2, 128, %s52_s22, [#allocation7], %s681_s20, %s681_s20, %s682_s25  }
  0x49   :  { %s624_s17 = scalar_lea.hbm %s873_s7, 256 }
  0x4a   :  { %p625_p4 = scmp.ne.s32.totalorder %s873_s7, %s624_s17  ;;  %p628_p5 = scmp.lt.u32.totalorder %s624_s17, %s873_s7 }
  0x4c   :  { %p630_p6 = pnand %p628_p5, %p625_p4 }
  0x4e   :  { %633 = shalt.err (!%p630_p6)
}
  0x4f   :  { %s634_s21 = scalar_lea.vmem %s82_s24, 256  ;;  %p639_p8 = scmp.lt.s32.totalorder %s82_s24, %s82_s24 }
  0x50   :  { %p635_p7 = scmp.ne.s32.totalorder %s82_s24, %s634_s21  ;;  %p640_p9 = scmp.lt.s32.totalorder %s634_s21, %s634_s21 }
  0x52   :  { %p641_p10 = por %p640_p9, %p639_p8 }
  0x54   :  { %p642_p11 = pnand %p641_p10, %p635_p7 }
  0x56   :  { %645 = shalt.err (!%p642_p11)
}
  0x57   :  { %87 = dma.hbm_to_vmem [thread:$0]  %s873_s7, 256, %s82_s24, [#allocation10], %s681_s20, %s681_s20, %s682_s25  }
  0x58   :  { %668 = dma.done.wait [#allocation4], 256  }
  0x59   :  { %669 = vsyncadd [#allocation4], 4294967040 }
  0x5a   :  { %670 = dma.done.wait [#allocation7], 384  }
  0x5b   :  { %671 = vsyncadd [#allocation7], 4294966912 }
  0x5c   :  { %672 = dma.done.wait [#allocation10], 384  }
  0x5d   :  { %673 = vsyncadd [#allocation10], 4294966912  ;;  %v685_v1 = vmov 0.0   ;;  %vm686_vm0 = vmmov 0   ;;  %v530_v2 = vld [vmem:[#allocation9] sm:$0xff]   ;;  %v531_v3 = vld [vmem:[#allocation8] sm:$0xff]   ;;  %v387_v60 = vlaneseq }
  0x5e   :  { %482 = vmatprep.subr.bf16.mxu0 %v685_v1  ;;  %488 = vmatprep.subr.bf16.mxu1 %v685_v1  ;;  %v113_v4 = vld [vmem:[#allocation6] sm:$0xff]  ;;  %v114_v5 = vld [vmem:[#allocation6 + $0x8] sm:$0xff]  ;;  %vm126_vm1 = vcmask 130048   ;;  %v110_v6 = vld [vmem:[#allocation3] sm:$0xff]  ;;  %vm258_vm2 = vcmask 261120   ;;  %v687_v45 = vmov 0  }
  0x5f   :  { %484 = vmatprep.mubr.msk.bf16.mxu0 %vm686_vm0, %v685_v1  ;;  %490 = vmatprep.mubr.msk.bf16.mxu1 %vm686_vm0, %v685_v1  ;;  %v115_v7 = vpack.c.bf16 %v114_v5, %v113_v4  ;;  %v111_v8 = vld [vmem:[#allocation3 + $0x8] sm:$0xff]  ;;  %v532_v10 = vld [vmem:[%s871_s5] sm:$0xff]   ;;  %v534_v30 = vld [vmem:[#allocation11] sm:$0xff]   ;;  %v388_v61 = vshrl.u32 %v387_v60, 7  ;;  %vm437_vm3 = vcmask 122880  }
  0x60   :  { %483 = vmatpush3.bf16.msra.mxu0 %v530_v2  ;;  %489 = vmatpush3.bf16.msra.mxu1 %v531_v3  ;;  %v112_v9 = vpack.c.bf16 %v111_v8, %v110_v6  ;;  %v533_v11 = vld [vmem:[%s871_s5 + $0x8] sm:$0xff]   ;;  %v460_v14 = vld [vmem:[%s870_s4] ss:$0 sm:$0xff] }
  0x61   :  { %494 = vmatprep.subr.bf16.mxu0 %v685_v1  ;;  %502 = vmatprep.subr.bf16.mxu1 %v685_v1  ;;  %v535_v31 = vld [vmem:[#allocation11 + $0x8] sm:$0xff]   ;;  %v389_v62 = vsub.s32 0, %v388_v61 }
  0x62   :  { %v461_v32 = vld [vmem:[%s872_s6] ss:$0 sm:$0xff]  ;;  %529 = vset.pattern.permute.xlu0 %v687_v45 }
  0x63   :  { %485 = vmatmul.mubr.msk.bf16.vlgmr.msra.gmra.mrb[0].mxu0 %vm126_vm1, %v115_v7  ;;  %491 = vmatmul.mubr.msk.bf16.vlgmr.msra.gmra.mrb[0].mxu1 %vm126_vm1, %v112_v9  ;;  %v381_v44 = vld [vmem:[#allocation2] sm:$0x1] }
  0x64   :  { %498 = vmatprep.mubr.msk.bf16.mxu0 %vm686_vm0, %v685_v1  ;;  %506 = vmatprep.mubr.msk.bf16.mxu1 %vm686_vm0, %v685_v1  ;;  %v465_v46 = vld [vmem:[%s874_s8] ss:$0 sm:$0xff]  ;;  %s688_s8 = smov [#allocation12]  }
  0x65   :  { %495 = vmatpush3.bf16.msra.mxu0 %v532_v10  ;;  %503 = vmatpush3.bf16.msra.mxu1 %v534_v30  ;;  %v380_v59 = vld [vmem:[%s875_s9] sm:$0x1]  ;;  %s445_s30 = sshll.u32 %s688_s8, 4  ;;  %s446_s30 = int_to_ptr.vmem [resolvable:$true] %s445_s30 }
  0x66   :  { %496 = vmatprep.subr.bf16.mxu0 %v685_v1  ;;  %504 = vmatprep.subr.bf16.mxu1 %v685_v1  ;;  %s646_s12 = scalar_lea.vmem %s446_s30, 16  ;;  %s650_s9 = scalar_lea.vmem %s446_s30, 32 }
  0x67   :  { %384 = vperm.xlu0 %529, %v381_v44   ;;  %p647_p12 = scmp.ne.s32.totalorder %s446_s30, %s646_s12  ;;  %p651_p13 = scmp.lt.s32.totalorder %s446_s30, %s446_s30 }
  0x68   :  { %p652_p0 = scmp.lt.s32.totalorder %s650_s9, %s646_s12 }
  0x69   :  { %497 = vmatpush3.bf16.msra.mxu0 %v533_v11  ;;  %505 = vmatpush3.bf16.msra.mxu1 %v535_v31 }
  0x6a   :  { %510 = vmatprep.subr.bf16.mxu0 %v685_v1  ;;  %p653_p1 = por %p652_p0, %p651_p13 }
  0x6c   :  { %p654_p2 = pnand %p653_p1, %p647_p12 }
  0xe6   :  { %v385_v63 = vpop.permute.xlu0 %384 }
  0xe7   :  { %v390_v0 = vrot.slane %v385_v63, %v389_v62 }
 0x136   :  { %v164_v12 = vpop.f32.mrb[0].mxu0  ;;  %v214_v13 = vpop.f32.mrb[0].mxu1 }
 0x137   :  { %v486_v15 = vpop.f32.mrb[1].mxu0  ;;  %v215_v16 = vadd.f32 %v214_v13, %v164_v12  ;;  %v492_v17 = vpop.f32.mrb[1].mxu1 }
 0x138   :  { %v167_v18 = vpop.f32.mrb[2].mxu0  ;;  %v217_v19 = vpop.f32.mrb[2].mxu1 }
 0x139   :  { %v487_v20 = vpop.f32.mrb[3].mxu0  ;;  %v228_v21 = vadd.f32 %v460_v14, %v215_v16  ;;  %v218_v22 = vadd.f32 %v217_v19, %v167_v18  ;;  %v493_v23 = vpop.f32.mrb[3].mxu1 }
 0x13b   :  { %v230_v24 = vmax.f32 %v228_v21, 0.0  ;;  %v229_v25 = vadd.f32 %v460_v14, %v218_v22 }
 0x13d   :  { %v231_v26 = vmax.f32 %v229_v25, 0.0  ;;  %v232_v27 = vmin.f32 %v230_v24, 6.0 }
 0x13f   :  { %v233_v28 = vmin.f32 %v231_v26, 6.0 }
 0x141   :  { %v234_v29 = vpack.c.bf16 %v233_v28, %v232_v27 }
 0x143   :  { %499 = vmatmul.mubr.msk.bf16.vlgmr.msra.gmra.mrb[4].mxu0 %vm258_vm2, %v234_v29 }
 0x144   :  { %512 = vmatprep.mubr.msk.bf16.mxu0 %vm686_vm0, %v685_v1 }
 0x216   :  { %v296_v33 = vpop.f32.mrb[4].mxu0 }
 0x217   :  { %v297_v34 = vadd.f32 %v461_v32, %v296_v33  ;;  %v500_v35 = vpop.f32.mrb[5].mxu0 }
 0x218   :  { %v299_v36 = vpop.f32.mrb[6].mxu0 }
 0x219   :  { %v303_v37 = vmax.f32 %v297_v34, 0.0  ;;  %v300_v38 = vadd.f32 %v461_v32, %v299_v36  ;;  %v501_v39 = vpop.f32.mrb[7].mxu0 }
 0x21b   :  { %v304_v40 = vmax.f32 %v300_v38, 0.0  ;;  %v305_v41 = vmin.f32 %v303_v37, 6.0 }
 0x21d   :  { %v306_v42 = vmin.f32 %v304_v40, 6.0 }
 0x21f   :  { %v307_v43 = vpack.c.bf16 %v306_v42, %v305_v41 }
 0x221   :  { %507 = vmatmul.mubr.msk.bf16.vlgmr.msra.gmra.mrb[4].mxu1 %vm258_vm2, %v307_v43 }
 0x2f4   :  { %v368_v47 = vpop.f32.mrb[4].mxu1 }
 0x2f5   :  { %v369_v48 = vadd.f32 %v465_v46, %v368_v47  ;;  %v508_v49 = vpop.f32.mrb[5].mxu1 }
 0x2f6   :  { %v371_v50 = vpop.f32.mrb[6].mxu1 }
 0x2f7   :  { %v375_v51 = vmax.f32 %v369_v48, 0.0  ;;  %v372_v52 = vadd.f32 %v465_v46, %v371_v50  ;;  %v509_v53 = vpop.f32.mrb[7].mxu1 }
 0x2f9   :  { %v376_v54 = vmax.f32 %v372_v52, 0.0  ;;  %v377_v55 = vmin.f32 %v375_v51, 6.0 }
 0x2fb   :  { %v378_v56 = vmin.f32 %v376_v54, 6.0 }
 0x2fd   :  { %v379_v57 = vpack.c.bf16 %v378_v56, %v377_v55 }
 0x2ff   :  { %v395_v58 = vsel %vm258_vm2, %v379_v57, 0 }
 0x300   :  { %511 = vmatpush3.bf16.xpose.msra.mxu0 %v395_v58 }
 0x307   :  { %513 = vmatmul.mubr.msk.bf16.vlgmr.msra.gmra.mrb[8].mxu0 %vm258_vm2, %v380_v59 }
 0x3da   :  { %v431_v1 = vpop.f32.mrb[8].mxu0 }
 0x3db   :  { %v432_v2 = vadd.f32 %v431_v1, %v390_v0  ;;  %v514_v3 = vpop.f32.mrb[9].mxu0 }
 0x3dc   :  { %v434_v4 = vpop.f32.mrb[10].mxu0 }
 0x3dd   :  { %v515_v5 = vpop.f32.mrb[11].mxu0  ;;  %438 = vst.msk [vmem:[#allocation12] sm:$0x1] %vm437_vm3, %v432_v2 }
 0x3de   :  { %657 = shalt.err (!%p654_p2)
}
 0x3df   :  { %s658_s28 = scalar_lea.hbm %s877_s11, 16 }
 0x3e0   :  { %p659_p3 = scmp.ne.s32.totalorder %s877_s11, %s658_s28  ;;  %p662_p4 = scmp.lt.u32.totalorder %s658_s28, %s877_s11 }
 0x3e2   :  { %p664_p5 = pnand %p662_p4, %p659_p3 }
 0x3e4   :  { %667 = shalt.err (!%p664_p5)
}
 0x3e5   :  { %448 = dma.vmem_to_hbm [thread:$0]  %s446_s30, 16, %s877_s11, [#allocation5]  }
 0x3e6   :  { %674 = dma.done.wait [#allocation5], 16  }
 0x3e7   :  { %675 = vsyncadd [#allocation5], 4294967280 }
 0x3e8   :  { %452 = vsyncpa [#allocation4], 1 }
 0x3e9   :  { %453 = vsyncpa [#allocation7], 1 }
 0x3ea   :  { %454 = vsyncpa [#allocation10], 1 }
 0x3eb   :  { %455 = vsyncpa [#allocation5], 1 }

</bundles_post_ra>
